<compile_context>
chip_gen: v7x
topology: tpu7x:2x2x1
jax: 0.10.0
libtpu: 0.0.40
codegen_flags: <defaults>
</compile_context>

<pallas_src>
import jax
import jax.numpy as jnp
from jax.experimental import pallas as pl
from jax.experimental.pallas import tpu as pltpu

NUM_CLASSES = 56
IGNORE_INDEX = -100           # PyTorch CrossEntropyLoss default
NUM_SPLITS = 2                # v7x has 2 TensorCores; harmless serial loop on v5e/v6e
MIN_ROWS_PER_SPLIT = 512      # below this, use a single split (avoid idle core / padding)
TILE_N_MAX = 4096             # rows per grid step; sized for the 32 MiB scoped VMEM limit


def _ce_kernel(logits_ref, label_ref, out_ref):
    # logits_ref: (tile_n, C)  native dtype in VMEM
    # label_ref : (tile_n, 1)  int32 in VMEM (lane-padded to 128 — accounted in budget)
    # out_ref   : (1, 1, 128)  f32 partials for this core-split:
    #             lane 0 = sum of per-row NLL, lane 1 = valid-row count.
    i = pl.program_id(1)

    @pl.when(i == 0)
    def _():
        out_ref[...] = jnp.zeros_like(out_ref)

    logits = logits_ref[...].astype(jnp.float32)                  # (tile_n, C)
    labels = label_ref[...]                                       # (tile_n, 1) int32
    c = logits.shape[1]

    # numerically stable log-sum-exp along the class (lane) axis — the only two
    # per-row cross-lane reductions left in the kernel.
    m = jnp.max(logits, axis=-1, keepdims=True)                   # (tile_n, 1)
    lse = jnp.log(jnp.sum(jnp.exp(logits - m), axis=-1, keepdims=True)) + m

    valid = (labels != IGNORE_INDEX).astype(jnp.float32)          # (tile_n, 1)

    # Target-logit contribution via ONE full-tile 2-D sum (elementwise VALU
    # accumulation + a single final cross-lane reduce) instead of a per-row
    # lane reduce.  class_ids is a (1, C) iota; broadcasting happens in the
    # compare, so no (tile_n, C) iota is materialized.
    # TODO(synk): PyTorch raises on labels >= 56 / invalid negatives; here they
    # are silently treated as target-logit 0 (no in-kernel error reporting).
    class_ids = jax.lax.broadcasted_iota(jnp.int32, (1, c), 1)    # (1, C)
    picked_sum = jnp.sum(jnp.where(class_ids == labels, logits, 0.0))

    total = jnp.sum(lse * valid) - picked_sum                     # sum of masked NLL
    count = jnp.sum(valid)

    # Accumulate the two scalars into lanes 0 / 1 of the resident output block.
    # This is a single-vreg iota + two selects per step (negligible).
    lane = jax.lax.broadcasted_iota(jnp.int32, out_ref.shape, 2)
    out_ref[...] += jnp.where(lane == 0, total, jnp.where(lane == 1, count, 0.0))


def _round_up(x, m):
    return ((x + m - 1) // m) * m


def cross_entropy(logits, label, *, tile_n_max=TILE_N_MAX):
    """Pallas equivalent of the PyTorch module's forward pass.

    logits: any shape flattening to (-1, 56); float dtype (kept native for DMA)
    label : matching shape flattening to (-1,); integer class ids (-100 = ignore)
    returns: scalar float32 mean cross-entropy loss over valid rows
    """
    logits2d = jnp.reshape(logits, (-1, NUM_CLASSES))             # no f32 cast here
    labels2d = jnp.reshape(label, (-1, 1)).astype(jnp.int32)
    n = logits2d.shape[0]

    # bf16 packs 16 rows per (16,128) block; f32 packs 8.
    row_align = 16 if jnp.dtype(logits2d.dtype).itemsize < 4 else 8

    # Small-N fallback: don't shard the row loop across TensorCores when each
    # split would only get a sliver of (possibly mostly-padded) work.
    num_splits = NUM_SPLITS if n >= NUM_SPLITS * MIN_ROWS_PER_SPLIT else 1

    tile_n = min(tile_n_max, _round_up(pl.cdiv(n, num_splits), row_align))
    tile_n = _round_up(tile_n, row_align)
    tiles_per_split = pl.cdiv(n, num_splits * tile_n)
    n_padded = num_splits * tiles_per_split * tile_n

    if n_padded != n:
        pad = n_padded - n
        logits2d = jnp.pad(logits2d, ((0, pad), (0, 0)))                 # zeros, masked out
        labels2d = jnp.pad(labels2d, ((0, pad), (0, 0)),
                           constant_values=IGNORE_INDEX)                 # padded rows ignored

    dtype_bytes = jnp.dtype(logits2d.dtype).itemsize
    cost = pl.CostEstimate(
        flops=8 * n_padded * NUM_CLASSES,
        transcendentals=n_padded * (NUM_CLASSES + 1),
        bytes_accessed=n_padded * NUM_CLASSES * dtype_bytes + n_padded * 4,
    )

    tps = tiles_per_split  # closure capture for the index maps

    partials = pl.pallas_call(
        _ce_kernel,
        out_shape=jax.ShapeDtypeStruct((num_splits, 1, 128), jnp.float32),
        grid_spec=pltpu.PrefetchScalarGridSpec(
            num_scalar_prefetch=0,
            grid=(num_splits, tiles_per_split),
            in_specs=[
                pl.BlockSpec((tile_n, NUM_CLASSES),
                             lambda c, i: (c * tps + i, 0)),
                pl.BlockSpec((tile_n, 1),
                             lambda c, i: (c * tps + i, 0)),
            ],
            out_specs=pl.BlockSpec((1, 1, 128), lambda c, i: (c, 0, 0)),
        ),
        compiler_params=pltpu.CompilerParams(
            dimension_semantics=("parallel", "arbitrary"),
            vmem_limit_bytes=32 * 1024 * 1024,
        ),
        cost_estimate=cost,
    )(logits2d, labels2d)

    total = jnp.sum(partials[:, 0, 0])
    count = jnp.sum(partials[:, 0, 1])
    # count == 0 (every label is ignore_index) yields NaN, matching PyTorch's
    # mean reduction in that degenerate case.
    return total / count


def _ref_ce(logits, label):
    """Pure-JAX reference with the same math as torch.nn.CrossEntropyLoss."""
    lg = jnp.asarray(logits, jnp.float32).reshape(-1, NUM_CLASSES)
    lb = jnp.asarray(label).reshape(-1)
    valid = lb != IGNORE_INDEX
    lb_safe = jnp.where(valid, lb, 0)
    logz = jax.scipy.special.logsumexp(lg, axis=-1)
    nll = logz - lg[jnp.arange(lg.shape[0]), lb_safe]
    return jnp.sum(jnp.where(valid, nll, 0.0)) / jnp.sum(valid)


if __name__ == "__main__":
    key = jax.random.PRNGKey(0)
    k_logits, k_label = jax.random.split(key)

    # small shapes consistent with the module: batch=2, seq=8, classes=56
    batch, seq = 2, 8
    logits = jax.random.normal(k_logits, (batch, seq, NUM_CLASSES), dtype=jnp.float32)
    label = jax.random.randint(k_label, (batch, seq), 0, NUM_CLASSES, dtype=jnp.int32)
    # exercise ignore_index masking
    label = label.at[0, 3].set(IGNORE_INDEX).at[1, 5].set(IGNORE_INDEX)

    loss = jax.block_until_ready(cross_entropy(logits, label))
    ref = _ref_ce(logits, label)
    assert jnp.allclose(loss, ref, rtol=1e-5, atol=1e-5), (loss, ref)

    # multi-tile accumulation path: N=64 rows, single split, 8 tiles of 8 rows
    k2l, k2y = jax.random.split(jax.random.PRNGKey(1))
    logits2 = jax.random.normal(k2l, (4, 16, NUM_CLASSES), dtype=jnp.float32)
    label2 = jax.random.randint(k2y, (4, 16), 0, NUM_CLASSES, dtype=jnp.int32)
    loss2 = jax.block_until_ready(cross_entropy(logits2, label2, tile_n_max=8))
    ref2 = _ref_ce(logits2, label2)
    assert jnp.allclose(loss2, ref2, rtol=1e-5, atol=1e-5), (loss2, ref2)

    # two-split ("parallel") path with row padding: N=2002 rows -> 2 x 1008
    k3l, k3y = jax.random.split(jax.random.PRNGKey(2))
    logits3 = jax.random.normal(k3l, (77, 26, NUM_CLASSES), dtype=jnp.float32)
    label3 = jax.random.randint(k3y, (77, 26), 0, NUM_CLASSES, dtype=jnp.int32)
    label3 = label3.at[0, 0].set(IGNORE_INDEX).at[50, 13].set(IGNORE_INDEX)
    loss3 = jax.block_until_ready(cross_entropy(logits3, label3))
    ref3 = _ref_ce(logits3, label3)
    assert jnp.allclose(loss3, ref3, rtol=2e-5, atol=1e-5), (loss3, ref3)

    # native bf16 path (no wrapper-side f32 cast; tile rounds to 16 rows)
    loss4 = jax.block_until_ready(cross_entropy(logits.astype(jnp.bfloat16), label))
    ref4 = _ref_ce(logits.astype(jnp.bfloat16), label)
    assert jnp.allclose(loss4, ref4, rtol=1e-3, atol=1e-3), (loss4, ref4)

    print("KERNEL_OK")
</pallas_src>

<mosaic_0001>
module attributes {stable_mosaic.version = 11 : i64} {
  func.func @_ce_kernel(%arg0: i32, %arg1: i32, %arg2: memref<16x56xf32, #tpu.memory_space<vmem>>, %arg3: memref<16x1xi32, #tpu.memory_space<vmem>>, %arg4: memref<1x1x128xf32, #tpu.memory_space<vmem>>) attributes {dimension_semantics = [#tpu.dimension_semantics<parallel>, #tpu.dimension_semantics<arbitrary>], iteration_bounds = array<i64: 1, 1>, scalar_prefetch = 0 : i64, scratch_operands = 0 : i64, tpu.core_type = #tpu.core_type<tc>, window_params = [{transform_indices = @transform_0, window_bounds = array<i64: 16, 56>}, {transform_indices = @transform_1, window_bounds = array<i64: 16, 1>}, {transform_indices = @transform_2, window_bounds = array<i64: 1, 1, 128>}]} {
    %c0_i32 = arith.constant 0 : i32
    %0 = arith.cmpi eq, %arg1, %c0_i32 : i32
    %1 = arith.extui %0 : i1 to i32
    %c0_i32_0 = arith.constant 0 : i32
    %2 = arith.cmpi ne, %1, %c0_i32_0 : i32
    scf.if %2 {
      %cst_17 = arith.constant 0.000000e+00 : f32
      %51 = vector.broadcast %cst_17 : f32 to vector<1x1x128xf32>
      %c0_18 = arith.constant 0 : index
      %c0_19 = arith.constant 0 : index
      %c0_20 = arith.constant 0 : index
      %52 = vector.load %arg4[%c0_18, %c0_19, %c0_20] : memref<1x1x128xf32, #tpu.memory_space<vmem>>, vector<1x1x128xf32>
      tpu.vector_store %arg4[%c0_18, %c0_19, %c0_20], %51 {strides = array<i32>} : memref<1x1x128xf32, #tpu.memory_space<vmem>>, vector<1x1x128xf32>,
    } else {
    }
    %c0 = arith.constant 0 : index
    %c0_1 = arith.constant 0 : index
    %3 = vector.load %arg2[%c0, %c0_1] : memref<16x56xf32, #tpu.memory_space<vmem>>, vector<16x56xf32>
    %c0_2 = arith.constant 0 : index
    %c0_3 = arith.constant 0 : index
    %4 = vector.load %arg3[%c0_2, %c0_3] : memref<16x1xi32, #tpu.memory_space<vmem>>, vector<16x1xi32>
    %cst = arith.constant dense<0xFF800000> : vector<16xf32>
    %5 = vector.multi_reduction <maximumf>, %3, %cst [1] : vector<16x56xf32> to vector<16xf32>
    %6 = vector.shape_cast %5 : vector<16xf32> to vector<16x1xf32>
    %7 = vector.broadcast %6 : vector<16x1xf32> to vector<16x56xf32>
    %8 = arith.subf %3, %7 : vector<16x56xf32>
    %9 = math.exp %8 : vector<16x56xf32>
    %cst_4 = arith.constant dense<0.000000e+00> : vector<16xf32>
    %10 = vector.multi_reduction <add>, %9, %cst_4 [1] : vector<16x56xf32> to vector<16xf32>
    %11 = vector.shape_cast %10 : vector<16xf32> to vector<16x1xf32>
    %12 = math.log %11 : vector<16x1xf32>
    %13 = arith.addf %12, %6 : vector<16x1xf32>
    %c-100_i32 = arith.constant -100 : i32
    %14 = vector.broadcast %c-100_i32 : i32 to vector<16x1xi32>
    %15 = arith.cmpi ne, %4, %14 : vector<16x1xi32>
    %16 = arith.extui %15 : vector<16x1xi1> to vector<16x1xi32>
    %17 = arith.sitofp %16 : vector<16x1xi32> to vector<16x1xf32>
    %18 = tpu.iota {dimensions = array<i32: 1>} : vector<1x56xi32>
    %19 = vector.broadcast %18 : vector<1x56xi32> to vector<16x56xi32>
    %20 = vector.broadcast %4 : vector<16x1xi32> to vector<16x56xi32>
    %21 = arith.cmpi eq, %19, %20 : vector<16x56xi32>
    %cst_5 = arith.constant 0.000000e+00 : f32
    %22 = vector.broadcast %cst_5 : f32 to vector<16x56xf32>
    %23 = arith.select %21, %3, %22 : vector<16x56xi1>, vector<16x56xf32>
    %24 = vector.shape_cast %23 : vector<16x56xf32> to vector<1x16x56xf32>
    %cst_6 = arith.constant dense<0.000000e+00> : vector<1xf32>
    %25 = vector.multi_reduction <add>, %24, %cst_6 [1, 2] : vector<1x16x56xf32> to vector<1xf32>
    %26 = vector.shape_cast %25 : vector<1xf32> to vector<1x1x1xf32>
    %27 = vector.extract %26[0, 0, 0] : f32 from vector<1x1x1xf32>
    %28 = arith.mulf %13, %17 : vector<16x1xf32>
    %29 = vector.shape_cast %28 : vector<16x1xf32> to vector<1x16x1xf32>
    %cst_7 = arith.constant dense<0.000000e+00> : vector<1xf32>
    %30 = vector.multi_reduction <add>, %29, %cst_7 [1, 2] : vector<1x16x1xf32> to vector<1xf32>
    %31 = vector.shape_cast %30 : vector<1xf32> to vector<1x1x1xf32>
    %32 = vector.extract %31[0, 0, 0] : f32 from vector<1x1x1xf32>
    %33 = arith.subf %32, %27 : f32
    %34 = vector.shape_cast %17 : vector<16x1xf32> to vector<1x16x1xf32>
    %cst_8 = arith.constant dense<0.000000e+00> : vector<1xf32>
    %35 = vector.multi_reduction <add>, %34, %cst_8 [1, 2] : vector<1x16x1xf32> to vector<1xf32>
    %36 = vector.shape_cast %35 : vector<1xf32> to vector<1x1x1xf32>
    %37 = vector.extract %36[0, 0, 0] : f32 from vector<1x1x1xf32>
    %38 = tpu.iota {dimensions = array<i32: 2>} : vector<1x1x128xi32>
    %c0_9 = arith.constant 0 : index
    %c0_10 = arith.constant 0 : index
    %c0_11 = arith.constant 0 : index
    %39 = vector.load %arg4[%c0_9, %c0_10, %c0_11] : memref<1x1x128xf32, #tpu.memory_space<vmem>>, vector<1x1x128xf32>
    %c0_i32_12 = arith.constant 0 : i32
    %40 = vector.broadcast %c0_i32_12 : i32 to vector<1x1x128xi32>
    %41 = arith.cmpi eq, %38, %40 : vector<1x1x128xi32>
    %c1_i32 = arith.constant 1 : i32
    %42 = vector.broadcast %c1_i32 : i32 to vector<1x1x128xi32>
    %43 = arith.cmpi eq, %38, %42 : vector<1x1x128xi32>
    %cst_13 = arith.constant 0.000000e+00 : f32
    %44 = vector.broadcast %37 : f32 to vector<1x1x128xf32>
    %45 = vector.broadcast %cst_13 : f32 to vector<1x1x128xf32>
    %46 = arith.select %43, %44, %45 : vector<1x1x128xi1>, vector<1x1x128xf32>
    %47 = vector.broadcast %33 : f32 to vector<1x1x128xf32>
    %48 = arith.select %41, %47, %46 : vector<1x1x128xi1>, vector<1x1x128xf32>
    %49 = arith.addf %39, %48 : vector<1x1x128xf32>
    %c0_14 = arith.constant 0 : index
    %c0_15 = arith.constant 0 : index
    %c0_16 = arith.constant 0 : index
    %50 = vector.load %arg4[%c0_14, %c0_15, %c0_16] : memref<1x1x128xf32, #tpu.memory_space<vmem>>, vector<1x1x128xf32>
    tpu.vector_store %arg4[%c0_14, %c0_15, %c0_16], %49 {strides = array<i32>} : memref<1x1x128xf32, #tpu.memory_space<vmem>>, vector<1x1x128xf32>,
    return
  }
  func.func @transform_0(%arg0: i32, %arg1: i32) -> (i32, i32) {
    %c1_i32 = arith.constant 1 : i32
    %0 = arith.muli %arg0, %c1_i32 : i32
    %1 = arith.addi %0, %arg1 : i32
    %c0_i32 = arith.constant 0 : i32
    %c0_i32_0 = arith.constant 0 : i32
    return %1, %c0_i32 : i32, i32
  }
  func.func @transform_1(%arg0: i32, %arg1: i32) -> (i32, i32) {
    %c1_i32 = arith.constant 1 : i32
    %0 = arith.muli %arg0, %c1_i32 : i32
    %1 = arith.addi %0, %arg1 : i32
    %c0_i32 = arith.constant 0 : i32
    %c0_i32_0 = arith.constant 0 : i32
    return %1, %c0_i32 : i32, i32
  }
  func.func @transform_2(%arg0: i32, %arg1: i32) -> (i32, i32, i32) {
    %c0_i32 = arith.constant 0 : i32
    %c0_i32_0 = arith.constant 0 : i32
    %c0_i32_1 = arith.constant 0 : i32
    return %arg0, %c0_i32, %c0_i32_0 : i32, i32, i32
  }
}

</mosaic_0001>

<bundles_post_ra>
// kernel: tpu_custom_call.1
= control target key start
LH: loop header
LB: loop body
LE: loop exit
PB: predicated region body
PF: predicated region fallthrough
CT: control target
= control target key end

     0   :  { %vm65_vm0 = vcmask 457728   ;;  %s286_s0 = inlined_call_operand.vmem [shape: f32[16,56], index: 0, kind: input, shape index: {}]   ;;  %s287_s1 = inlined_call_operand.vmem [shape: s32[16,1], index: 1, kind: input, shape index: {}]   ;;  %s288_s2 = inlined_call_operand.hbm [shape: f32[1,1,128], index: 2, kind: output, shape index: {}]  }
   0x1   :  { %v61_v0 = vld [vmem:[%s286_s0] sm:$0xff]  ;;  %v62_v1 = vld [vmem:[%s286_s0 + $0x8] sm:$0xff] }
   0x2   :  { %7 = vsyncpa [#allocation3], 0  ;;  %v66_v2 = vsel %vm65_vm0, %v61_v0, -inf  ;;  %v69_v3 = vsel %vm65_vm0, %v62_v1, -inf  ;;  %v63_v4 = vld [vmem:[%s287_s1] sm:$0xff]  ;;  %v228_v5 = vmov 0   ;;  %v96_v23 = vlaneseq }
   0x3   :  { %67 = vmax.xlane.f32.xlu0 %v66_v2  ;;  %195 = vset.pattern.permute.xlu1 %v228_v5  ;;  %v64_v16 = vld [vmem:[%s287_s1 + $0x8] sm:$0xff]  ;;  %vm90_vm1 = vcmp.ne.s32.totalorder %v63_v4, 4294967196  ;;  %v229_v17 = vmov 0.0   ;;  %vm122_vm3 = vcmask 7168   ;;  %s230_s19 = smov [#allocation2]  }
   0x4   :  { %194 = vset.pattern.permute.xlu0 %v228_v5  ;;  %vm91_vm2 = vcmp.ne.s32.totalorder %v64_v16, 4294967196  ;;  %v183_v18 = vsel %vm90_vm1, 1.0, %v229_v17  ;;  %60 = vst [vmem:[#allocation2] sm:$0x1] %v229_v17  ;;  %v264_v24 = vand.u32 127, %v96_v23  ;;  %s163_s20 = sshll.u32 %s230_s19, 4  ;;  %s164_s20 = int_to_ptr.vmem [resolvable:$true] %s163_s20 }
   0x5   :  { %v184_v19 = vsel %vm91_vm2, 1.0, %v229_v17  ;;  %v136_v20 = vsel %vm122_vm3, %v183_v18, 0.0  ;;  %s204_s21 = scalar_lea.vmem %s164_s20, 16  ;;  %s208_s22 = scalar_lea.vmem %s164_s20, 32 }
   0x6   :  { %v137_v21 = vsel %vm122_vm3, %v184_v19, 0.0  ;;  %vm150_vm6 = vcmp.eq.s32.totalorder %v264_v24, 1  ;;  %vm149_vm7 = vcmp.eq.s32.totalorder %v264_v24, 0  ;;  %p205_p0 = scmp.ne.s32.totalorder %s164_s20, %s204_s21  ;;  %p209_p1 = scmp.lt.s32.totalorder %s164_s20, %s164_s20 }
   0x7   :  { %70 = vmax.xlane.f32.xlu0 %v69_v3  ;;  %v138_v22 = vadd.f32 %v137_v21, %v136_v20  ;;  %p210_p2 = scmp.lt.s32.totalorder %s208_s22, %s204_s21 }
   0x9   :  { %p211_p3 = por %p210_p2, %p209_p1 }
   0xb   :  { %v148_v2 = vld [vmem:[#allocation2] sm:$0x1]  ;;  %p212_p4 = pnand %p211_p3, %p205_p0 }
  0x1d   :  { %99 = vperm.xlu0 %194, %v63_v4  }
  0x90   :  { %v68_v6 = vpop.xlane.xlu0 %67 }
  0x91   :  { %v72_v7 = vsub.f32 %v61_v0, %v68_v6 }
  0x93   :  { %v74_v8 = vmul.f32 1.442695, %v72_v7 }
  0x94   :  { %v71_v9 = vpop.xlane.xlu0 %70 }
  0x95   :  { %196 = vpow2.f32 %v74_v8  ;;  %v73_v10 = vsub.f32 %v62_v1, %v71_v9 }
  0x97   :  { %v76_v11 = vmul.f32 1.442695, %v73_v10 }
  0x99   :  { %198 = vpow2.f32 %v76_v11 }
  0x9c   :  { %v100_v26 = vpop.permute.xlu0 %99 }
  0x9d   :  { %vm104_vm4 = vcmp.eq.s32.totalorder %v264_v24, %v100_v26 }
  0x9e   :  { %v106_v28 = vsel %vm104_vm4, %v61_v0, 0.0 }
  0x9f   :  { %v197_v12 = vpop.eup %196  ;;  %v108_v30 = vsel %vm65_vm0, %v106_v28, 0.0 }
  0xa0   :  { %v78_v13 = vsel %vm65_vm0, %v197_v12, 0.0 }
  0xa1   :  { %79 = vadd.xlane.f32.xlu1 %v78_v13 }
  0xa3   :  { %v199_v14 = vpop.eup %198 }
  0xa4   :  { %v81_v15 = vsel %vm65_vm0, %v199_v14, 0.0 }
  0xa5   :  { %82 = vadd.xlane.f32.xlu1 %v81_v15 }
  0xb6   :  { %102 = vperm.xlu1 %195, %v64_v16  }
 0x12e   :  { %v80_v25 = vpop.xlane.xlu1 %79 }
 0x12f   :  { %200 = vlog2.f32 %v80_v25 }
 0x132   :  { %v83_v27 = vpop.xlane.xlu1 %82 }
 0x133   :  { %202 = vlog2.f32 %v83_v27 }
 0x136   :  { %v103_v29 = vpop.permute.xlu1 %102 }
 0x137   :  { %vm105_vm5 = vcmp.eq.s32.totalorder %v264_v24, %v103_v29 }
 0x138   :  { %v107_v31 = vsel %vm105_vm5, %v62_v1, 0.0 }
 0x139   :  { %v201_v32 = vpop.eup %200  ;;  %v109_v33 = vsel %vm65_vm0, %v107_v31, 0.0 }
 0x13a   :  { %v85_v34 = vmul.f32 0.6931472, %v201_v32  ;;  %v110_v35 = vadd.f32 %v109_v33, %v108_v30 }
 0x13c   :  { %v88_v36 = vadd.f32 %v85_v34, %v68_v6  ;;  %111 = vadd.xlane.f32.xlu1 %v110_v35 }
 0x13d   :  { %v203_v37 = vpop.eup %202 }
 0x13e   :  { %v87_v38 = vmul.f32 0.6931472, %v203_v37  ;;  %v120_v40 = vmul.f32 %v183_v18, %v88_v36 }
 0x140   :  { %v89_v39 = vadd.f32 %v87_v38, %v71_v9  ;;  %139 = vadd.xlane.f32.xlu1 %v138_v22  ;;  %v123_v42 = vsel %vm122_vm3, %v120_v40, 0.0 }
 0x142   :  { %v121_v41 = vmul.f32 %v184_v19, %v89_v39 }
 0x144   :  { %v124_v43 = vsel %vm122_vm3, %v121_v41, 0.0 }
 0x145   :  { %v125_v44 = vadd.f32 %v124_v43, %v123_v42 }
 0x147   :  { %126 = vadd.xlane.f32.xlu0 %v125_v44 }
 0x1c9   :  { %v112_v45 = vpop.xlane.xlu1 %111 }
 0x1ca   :  { %v113_v46 = vrot.slane %v112_v45, 4 }
 0x1cc   :  { %v114_v47 = vadd.f32 %v113_v46, %v112_v45 }
 0x1cd   :  { %v140_v48 = vpop.xlane.xlu1 %139 }
 0x1ce   :  { %v115_v49 = vrot.slane %v114_v47, 2  ;;  %v141_v50 = vrot.slane %v140_v48, 4 }
 0x1d0   :  { %v142_v51 = vadd.f32 %v141_v50, %v140_v48  ;;  %v116_v52 = vadd.f32 %v115_v49, %v114_v47 }
 0x1d2   :  { %v117_v53 = vrot.slane %v116_v52, 1  ;;  %v143_v54 = vrot.slane %v142_v51, 2 }
 0x1d4   :  { %v127_v55 = vpop.xlane.xlu0 %126  ;;  %v118_v56 = vadd.f32 %v117_v53, %v116_v52  ;;  %v144_v59 = vadd.f32 %v143_v54, %v142_v51 }
 0x1d5   :  { %v128_v57 = vrot.slane %v127_v55, 4 }
 0x1d6   :  { %185 = vpush %v118_v56  ;;  %v145_v62 = vrot.slane %v144_v59, 1 }
 0x1d7   :  { %v129_v58 = vadd.f32 %v128_v57, %v127_v55 }
 0x1d8   :  { %v146_v1 = vadd.f32 %v145_v62, %v144_v59 }
 0x1d9   :  { %v130_v60 = vrot.slane %v129_v58, 2 }
 0x1db   :  { %v131_v61 = vadd.f32 %v130_v60, %v129_v58 }
 0x1dd   :  { %v132_v63 = vrot.slane %v131_v61, 1 }
 0x1df   :  { %v133_v0 = vadd.f32 %v132_v63, %v131_v61 }
 0x1e1   :  { %187 = vpush %v133_v0 }
 0x1e2   :  { %189 = vpush %v146_v1 }
 0x207   :  { %s186_s1 = spop %185 }
 0x212   :  { %s188_s16 = spop %187 }
 0x213   :  { %s135_s17 = ssub.f32 %s188_s16, %s186_s1  ;;  %s190_s18 = spop %189 }
 0x214   :  { %v151_v3 = vstv %s190_s18 }
 0x215   :  { %v153_v4 = vstv %s135_s17  ;;  %v152_v5 = vsel %vm150_vm6, %v151_v3, 0.0 }
 0x216   :  { %v154_v6 = vsel %vm149_vm7, %v153_v4, %v152_v5 }
 0x217   :  { %v155_v7 = vadd.f32 %v154_v6, %v148_v2 }
 0x219   :  { %156 = vst [vmem:[#allocation2] sm:$0x1] %v155_v7 }
 0x21a   :  { %215 = shalt.err (!%p212_p4)
}
 0x21b   :  { %s216_s25 = scalar_lea.hbm %s288_s2, 16 }
 0x21c   :  { %p217_p5 = scmp.ne.s32.totalorder %s288_s2, %s216_s25  ;;  %p220_p6 = scmp.lt.u32.totalorder %s216_s25, %s288_s2 }
 0x21e   :  { %p222_p7 = pnand %p220_p6, %p217_p5 }
 0x220   :  { %225 = shalt.err (!%p222_p7)
}
 0x221   :  { %166 = dma.vmem_to_hbm [thread:$0]  %s164_s20, 16, %s288_s2, [#allocation3]  }
 0x222   :  { %226 = dma.done.wait [#allocation3], 16  }
 0x223   :  { %227 = vsyncadd [#allocation3], 4294967280 }
 0x224   :  { %170 = vsyncpa [#allocation3], 1 }

</bundles_post_ra>
